<compile_context>
chip_gen: v5e
topology: v5e:2x2
jax: 0.10.0
libtpu: 0.0.40
codegen_flags: <defaults>
</compile_context>

<pallas_src>
import functools

import jax
import jax.numpy as jnp
from jax.experimental import pallas as pl
from jax.experimental.pallas import tpu as pltpu

_LANES = 128
_SUBLANES = 8


def _round_up(x, m):
    return (x + m - 1) // m * m


def mlp_softmax_kernel(emb_ref, xo_ref, w1e_ref, w1o_ref, b1_ref,
                       w2_ref, b2_ref, w3_ref, b3_ref, o_ref):
    # fc1: split-W1 replaces the concat  ->  emb @ W1[:E] + xo @ W1[E:] + b1, f32 accumulate.
    h1 = (jnp.dot(emb_ref[...], w1e_ref[...], preferred_element_type=jnp.float32)
          + jnp.dot(xo_ref[...], w1o_ref[...], preferred_element_type=jnp.float32)
          + b1_ref[...])
    h1 = jnp.maximum(h1, 0.0).astype(w2_ref.dtype)   # ReLU in f32, cast to bf16 for next MXU pass

    # fc2 + ReLU
    h2 = jnp.dot(h1, w2_ref[...], preferred_element_type=jnp.float32) + b2_ref[...]
    h2 = jnp.maximum(h2, 0.0).astype(w3_ref.dtype)

    # fc3 (lane-padded to 128 columns; padded bias = -1e30 -> zero probability after softmax)
    logits = jnp.dot(h2, w3_ref[...], preferred_element_type=jnp.float32) + b3_ref[...]

    # numerically stable softmax over dim=1; divide goes to the EUP via approx reciprocal.
    m = jnp.max(logits, axis=1, keepdims=True)
    e = jnp.exp(logits - m)
    denom = jnp.sum(e, axis=1, keepdims=True)
    o_ref[...] = e * pl.reciprocal(denom, approx=True)


def simple_nn_forward(x_customer, x_other, params, output_size, *, tile_b=1024):
    """Forward pass matching SimpleNN.forward.

    x_customer: int32 [B]   customer ids
    x_other:    float  [B, input_size]
    Returns float32 [B, output_size] softmax probabilities.
    """
    emb_table, w1e, w1o, b1, w2, b2, w3p, b3p = params
    E = emb_table.shape[1]
    F = x_other.shape[1]
    H1 = w1e.shape[1]
    H2 = w2.shape[1]
    NO = w3p.shape[1]          # lane-padded output width (multiple of 128)

    B = x_other.shape[0]
    tb = min(_round_up(tile_b, _SUBLANES), _round_up(B, _SUBLANES))
    B_pad = _round_up(B, tb)

    # Embedding gather stays as plain-JAX glue (data-dependent rows at element granularity
    # are not expressible as a blocked index_map here); concat is fused via split-W1.
    # TODO(synk): jnp.take clamps out-of-range ids while torch.nn.Embedding would raise.
    emb = jnp.take(emb_table, x_customer, axis=0)            # (B, E) bf16
    xo = x_other.astype(w1o.dtype)                           # bf16 stream (halves DMA bytes)
    if B_pad != B:
        emb = jnp.pad(emb, ((0, B_pad - B), (0, 0)))
        xo = jnp.pad(xo, ((0, B_pad - B), (0, 0)))

    grid = (B_pad // tb,)

    def batch_spec(shape):
        return pl.BlockSpec(shape, lambda i: (i, 0))

    def resident(shape):
        return pl.BlockSpec(shape, lambda i: (0, 0))

    weight_bytes = sum(int(a.size) * a.dtype.itemsize for a in (w1e, w1o, b1, w2, b2, w3p, b3p))
    cost = pl.CostEstimate(
        flops=2 * B_pad * ((E + F) * H1 + H1 * H2 + H2 * NO),
        transcendentals=B_pad * NO,
        bytes_accessed=int(emb.size) * emb.dtype.itemsize
        + int(xo.size) * xo.dtype.itemsize
        + weight_bytes
        + B_pad * NO * 4,
    )

    out_padded = pl.pallas_call(
        mlp_softmax_kernel,
        out_shape=jax.ShapeDtypeStruct((B_pad, NO), jnp.float32),
        grid_spec=pltpu.PrefetchScalarGridSpec(
            num_scalar_prefetch=0,
            grid=grid,
            in_specs=[
                batch_spec((tb, E)),        # embedded customer rows (streamed)
                batch_spec((tb, F)),        # other features (streamed)
                resident((E, H1)),          # W1 rows for the embedding half
                resident((F, H1)),          # W1 rows for the other-features half
                resident((1, H1)),          # b1
                resident((H1, H2)),         # W2
                resident((1, H2)),          # b2
                resident((H2, NO)),         # W3 (lane-padded)
                resident((1, NO)),          # b3 (lane-padded with -1e30)
            ],
            out_specs=batch_spec((tb, NO)),
        ),
        compiler_params=pltpu.CompilerParams(
            dimension_semantics=("parallel",),
        ),
        cost_estimate=cost,
    )(emb, xo, w1e, w1o, b1, w2, b2, w3p, b3p)

    return out_padded[:B, :output_size]


def init_params(key, num_unique_customer, embedding_dim, input_size, output_size):
    """Deterministic synthetic parameters (shapes match SimpleNN.__init__).

    Linear weights are stored transposed ([in, out]) and split/padded for the kernel:
      - W1 split into (embedding rows, other-feature rows)  -> split-W1 trick
      - W3/b3 lane-padded to a multiple of 128 (padded bias = -1e30 -> softmax prob 0)
    Weights are bf16 (native MXU path, f32 accumulation); biases stay f32.
    """
    ks = jax.random.split(key, 7)
    no_pad = _round_up(output_size, _LANES)

    emb_table = jax.random.normal(ks[0], (num_unique_customer, embedding_dim),
                                  jnp.float32).astype(jnp.bfloat16)
    w1 = jax.random.normal(ks[1], (embedding_dim + input_size, 48), jnp.float32) * 0.1
    b1 = jax.random.normal(ks[2], (1, 48), jnp.float32) * 0.1
    w2 = jax.random.normal(ks[3], (48, 24), jnp.float32) * 0.1
    b2 = jax.random.normal(ks[4], (1, 24), jnp.float32) * 0.1
    w3 = jax.random.normal(ks[5], (24, output_size), jnp.float32) * 0.1
    b3 = jax.random.normal(ks[6], (1, output_size), jnp.float32) * 0.1

    w1e = w1[:embedding_dim].astype(jnp.bfloat16)
    w1o = w1[embedding_dim:].astype(jnp.bfloat16)
    w2 = w2.astype(jnp.bfloat16)
    w3p = jnp.pad(w3, ((0, 0), (0, no_pad - output_size))).astype(jnp.bfloat16)
    b3p = jnp.pad(b3, ((0, 0), (0, no_pad - output_size)), constant_values=-1e30)

    return (emb_table, w1e, w1o, b1, w2, b2, w3p, b3p)


def reference_forward(x_customer, x_other, params, output_size):
    """Pure-JAX reference (same bf16 weights, f32 math)."""
    emb_table, w1e, w1o, b1, w2, b2, w3p, b3p = params
    e = jnp.take(emb_table, x_customer, axis=0).astype(jnp.float32)
    xo = x_other.astype(jnp.bfloat16).astype(jnp.float32)
    h1 = jax.nn.relu(e @ w1e.astype(jnp.float32) + xo @ w1o.astype(jnp.float32) + b1)
    h2 = jax.nn.relu(h1 @ w2.astype(jnp.float32) + b2)
    logits = h2 @ w3p.astype(jnp.float32)[:, :output_size] + b3p[:, :output_size]
    return jax.nn.softmax(logits, axis=1)


if __name__ == "__main__":
    # Small shapes consistent with the module.
    num_unique_customer = 64
    embedding_dim = 16
    input_size = 16
    output_size = 8
    batch = 8

    key = jax.random.PRNGKey(0)
    k_params, k_ids, k_other = jax.random.split(key, 3)

    params = init_params(k_params, num_unique_customer, embedding_dim, input_size, output_size)
    x_customer = jax.random.randint(k_ids, (batch,), 0, num_unique_customer, dtype=jnp.int32)
    x_other = jax.random.normal(k_other, (batch, input_size), jnp.float32)

    fwd = jax.jit(simple_nn_forward, static_argnames=("output_size", "tile_b"))
    out = fwd(x_customer, x_other, params, output_size=output_size)
    out = jax.block_until_ready(out)

    # Sanity checks: shape, softmax rows sum to ~1, and agreement with a pure-JAX reference
    # (tolerances account for bf16 weights/activations and the approximate reciprocal).
    ref = reference_forward(x_customer, x_other, params, output_size)
    row_sums = jnp.sum(out, axis=1)
    assert out.shape == (batch, output_size)
    assert bool(jnp.all(jnp.abs(row_sums - 1.0) < 1e-2))
    assert bool(jnp.all(jnp.abs(out - ref) < 2e-2))

    print("KERNEL_OK")
</pallas_src>

<mosaic_0001>
module attributes {stable_mosaic.version = 11 : i64} {
  func.func @mlp_softmax_kernel(%arg0: i32, %arg1: memref<8x16xbf16, #tpu.memory_space<vmem>>, %arg2: memref<8x16xbf16, #tpu.memory_space<vmem>>, %arg3: memref<16x48xbf16, #tpu.memory_space<vmem>>, %arg4: memref<16x48xbf16, #tpu.memory_space<vmem>>, %arg5: memref<1x48xf32, #tpu.memory_space<vmem>>, %arg6: memref<48x24xbf16, #tpu.memory_space<vmem>>, %arg7: memref<1x24xf32, #tpu.memory_space<vmem>>, %arg8: memref<24x128xbf16, #tpu.memory_space<vmem>>, %arg9: memref<1x128xf32, #tpu.memory_space<vmem>>, %arg10: memref<8x128xf32, #tpu.memory_space<vmem>>) attributes {dimension_semantics = [#tpu.dimension_semantics<parallel>], iteration_bounds = array<i64: 1>, scalar_prefetch = 0 : i64, scratch_operands = 0 : i64, tpu.core_type = #tpu.core_type<tc>, window_params = [{transform_indices = @transform_0, window_bounds = array<i64: 8, 16>}, {transform_indices = @transform_1, window_bounds = array<i64: 8, 16>}, {pipeline_mode = #tpu.pipeline_mode<synchronous>, transform_indices = @transform_2, window_bounds = array<i64: 16, 48>}, {pipeline_mode = #tpu.pipeline_mode<synchronous>, transform_indices = @transform_3, window_bounds = array<i64: 16, 48>}, {pipeline_mode = #tpu.pipeline_mode<synchronous>, transform_indices = @transform_4, window_bounds = array<i64: 1, 48>}, {pipeline_mode = #tpu.pipeline_mode<synchronous>, transform_indices = @transform_5, window_bounds = array<i64: 48, 24>}, {pipeline_mode = #tpu.pipeline_mode<synchronous>, transform_indices = @transform_6, window_bounds = array<i64: 1, 24>}, {pipeline_mode = #tpu.pipeline_mode<synchronous>, transform_indices = @transform_7, window_bounds = array<i64: 24, 128>}, {pipeline_mode = #tpu.pipeline_mode<synchronous>, transform_indices = @transform_8, window_bounds = array<i64: 1, 128>}, {transform_indices = @transform_9, window_bounds = array<i64: 8, 128>}]} {
    %c0 = arith.constant 0 : index
    %c0_0 = arith.constant 0 : index
    %0 = vector.load %arg1[%c0, %c0_0] : memref<8x16xbf16, #tpu.memory_space<vmem>>, vector<8x16xbf16>
    %c0_1 = arith.constant 0 : index
    %c0_2 = arith.constant 0 : index
    %1 = vector.load %arg3[%c0_1, %c0_2] : memref<16x48xbf16, #tpu.memory_space<vmem>>, vector<16x48xbf16>
    %cst = arith.constant dense<0.000000e+00> : vector<8x48xf32>
    %2 = tpu.matmul %0, %1, %cst {dimension_numbers = #tpu.dot_dimension_numbers<[1], [0], [0], [1], [0, 0, 1, 1], [], []>} : vector<8x16xbf16>, vector<16x48xbf16>, vector<8x48xf32> -> vector<8x48xf32>
    %c0_3 = arith.constant 0 : index
    %c0_4 = arith.constant 0 : index
    %3 = vector.load %arg2[%c0_3, %c0_4] : memref<8x16xbf16, #tpu.memory_space<vmem>>, vector<8x16xbf16>
    %c0_5 = arith.constant 0 : index
    %c0_6 = arith.constant 0 : index
    %4 = vector.load %arg4[%c0_5, %c0_6] : memref<16x48xbf16, #tpu.memory_space<vmem>>, vector<16x48xbf16>
    %cst_7 = arith.constant dense<0.000000e+00> : vector<8x48xf32>
    %5 = tpu.matmul %3, %4, %cst_7 {dimension_numbers = #tpu.dot_dimension_numbers<[1], [0], [0], [1], [0, 0, 1, 1], [], []>} : vector<8x16xbf16>, vector<16x48xbf16>, vector<8x48xf32> -> vector<8x48xf32>
    %6 = arith.addf %2, %5 : vector<8x48xf32>
    %c0_8 = arith.constant 0 : index
    %c0_9 = arith.constant 0 : index
    %7 = vector.load %arg5[%c0_8, %c0_9] : memref<1x48xf32, #tpu.memory_space<vmem>>, vector<1x48xf32>
    %8 = vector.broadcast %7 : vector<1x48xf32> to vector<8x48xf32>
    %9 = arith.addf %6, %8 : vector<8x48xf32>
    %cst_10 = arith.constant 0.000000e+00 : f32
    %10 = vector.broadcast %cst_10 : f32 to vector<8x48xf32>
    %11 = arith.maximumf %9, %10 : vector<8x48xf32>
    %12 = arith.truncf %11 : vector<8x48xf32> to vector<8x48xbf16>
    %c0_11 = arith.constant 0 : index
    %c0_12 = arith.constant 0 : index
    %13 = vector.load %arg6[%c0_11, %c0_12] : memref<48x24xbf16, #tpu.memory_space<vmem>>, vector<48x24xbf16>
    %cst_13 = arith.constant dense<0.000000e+00> : vector<8x24xf32>
    %14 = tpu.matmul %12, %13, %cst_13 {dimension_numbers = #tpu.dot_dimension_numbers<[1], [0], [0], [1], [0, 0, 1, 1], [], []>} : vector<8x48xbf16>, vector<48x24xbf16>, vector<8x24xf32> -> vector<8x24xf32>
    %c0_14 = arith.constant 0 : index
    %c0_15 = arith.constant 0 : index
    %15 = vector.load %arg7[%c0_14, %c0_15] : memref<1x24xf32, #tpu.memory_space<vmem>>, vector<1x24xf32>
    %16 = vector.broadcast %15 : vector<1x24xf32> to vector<8x24xf32>
    %17 = arith.addf %14, %16 : vector<8x24xf32>
    %cst_16 = arith.constant 0.000000e+00 : f32
    %18 = vector.broadcast %cst_16 : f32 to vector<8x24xf32>
    %19 = arith.maximumf %17, %18 : vector<8x24xf32>
    %20 = arith.truncf %19 : vector<8x24xf32> to vector<8x24xbf16>
    %c0_17 = arith.constant 0 : index
    %c0_18 = arith.constant 0 : index
    %21 = vector.load %arg8[%c0_17, %c0_18] : memref<24x128xbf16, #tpu.memory_space<vmem>>, vector<24x128xbf16>
    %cst_19 = arith.constant dense<0.000000e+00> : vector<8x128xf32>
    %22 = tpu.matmul %20, %21, %cst_19 {dimension_numbers = #tpu.dot_dimension_numbers<[1], [0], [0], [1], [0, 0, 1, 1], [], []>} : vector<8x24xbf16>, vector<24x128xbf16>, vector<8x128xf32> -> vector<8x128xf32>
    %c0_20 = arith.constant 0 : index
    %c0_21 = arith.constant 0 : index
    %23 = vector.load %arg9[%c0_20, %c0_21] : memref<1x128xf32, #tpu.memory_space<vmem>>, vector<1x128xf32>
    %24 = vector.broadcast %23 : vector<1x128xf32> to vector<8x128xf32>
    %25 = arith.addf %22, %24 : vector<8x128xf32>
    %cst_22 = arith.constant dense<0xFF800000> : vector<8xf32>
    %26 = vector.multi_reduction <maximumf>, %25, %cst_22 [1] : vector<8x128xf32> to vector<8xf32>
    %27 = vector.shape_cast %26 : vector<8xf32> to vector<8x1xf32>
    %28 = vector.broadcast %27 : vector<8x1xf32> to vector<8x128xf32>
    %29 = arith.subf %25, %28 : vector<8x128xf32>
    %30 = math.exp %29 : vector<8x128xf32>
    %cst_23 = arith.constant dense<0.000000e+00> : vector<8xf32>
    %31 = vector.multi_reduction <add>, %30, %cst_23 [1] : vector<8x128xf32> to vector<8xf32>
    %32 = vector.shape_cast %31 : vector<8xf32> to vector<8x1xf32>
    %33 = tpu.reciprocal %32 {approx = true} : vector<8x1xf32> -> vector<8x1xf32>
    %34 = vector.broadcast %33 : vector<8x1xf32> to vector<8x128xf32>
    %35 = arith.mulf %30, %34 : vector<8x128xf32>
    %c0_24 = arith.constant 0 : index
    %c0_25 = arith.constant 0 : index
    %36 = vector.load %arg10[%c0_24, %c0_25] : memref<8x128xf32, #tpu.memory_space<vmem>>, vector<8x128xf32>
    tpu.vector_store %arg10[%c0_24, %c0_25], %35 {strides = array<i32>} : memref<8x128xf32, #tpu.memory_space<vmem>>, vector<8x128xf32>,
    return
  }
  func.func @transform_0(%arg0: i32) -> (i32, i32) {
    %c0_i32 = arith.constant 0 : i32
    %c0_i32_0 = arith.constant 0 : i32
    return %arg0, %c0_i32 : i32, i32
  }
  func.func @transform_1(%arg0: i32) -> (i32, i32) {
    %c0_i32 = arith.constant 0 : i32
    %c0_i32_0 = arith.constant 0 : i32
    return %arg0, %c0_i32 : i32, i32
  }
  func.func @transform_2(%arg0: i32) -> (i32, i32) {
    %c0_i32 = arith.constant 0 : i32
    %c0_i32_0 = arith.constant 0 : i32
    %c0_i32_1 = arith.constant 0 : i32
    return %c0_i32, %c0_i32_0 : i32, i32
  }
  func.func @transform_3(%arg0: i32) -> (i32, i32) {
    %c0_i32 = arith.constant 0 : i32
    %c0_i32_0 = arith.constant 0 : i32
    %c0_i32_1 = arith.constant 0 : i32
    return %c0_i32, %c0_i32_0 : i32, i32
  }
  func.func @transform_4(%arg0: i32) -> (i32, i32) {
    %c0_i32 = arith.constant 0 : i32
    %c0_i32_0 = arith.constant 0 : i32
    %c0_i32_1 = arith.constant 0 : i32
    return %c0_i32, %c0_i32_0 : i32, i32
  }
  func.func @transform_5(%arg0: i32) -> (i32, i32) {
    %c0_i32 = arith.constant 0 : i32
    %c0_i32_0 = arith.constant 0 : i32
    %c0_i32_1 = arith.constant 0 : i32
    return %c0_i32, %c0_i32_0 : i32, i32
  }
  func.func @transform_6(%arg0: i32) -> (i32, i32) {
    %c0_i32 = arith.constant 0 : i32
    %c0_i32_0 = arith.constant 0 : i32
    %c0_i32_1 = arith.constant 0 : i32
    return %c0_i32, %c0_i32_0 : i32, i32
  }
  func.func @transform_7(%arg0: i32) -> (i32, i32) {
    %c0_i32 = arith.constant 0 : i32
    %c0_i32_0 = arith.constant 0 : i32
    %c0_i32_1 = arith.constant 0 : i32
    return %c0_i32, %c0_i32_0 : i32, i32
  }
  func.func @transform_8(%arg0: i32) -> (i32, i32) {
    %c0_i32 = arith.constant 0 : i32
    %c0_i32_0 = arith.constant 0 : i32
    %c0_i32_1 = arith.constant 0 : i32
    return %c0_i32, %c0_i32_0 : i32, i32
  }
  func.func @transform_9(%arg0: i32) -> (i32, i32) {
    %c0_i32 = arith.constant 0 : i32
    %c0_i32_0 = arith.constant 0 : i32
    return %arg0, %c0_i32 : i32, i32
  }
}

</mosaic_0001>

<bundles_post_ra>
// kernel: simple_nn_forward.1
= control target key start
LH: loop header
LB: loop body
LE: loop exit
PB: predicated region body
PF: predicated region fallthrough
CT: control target
= control target key end

     0   :  { %vm46_vm0 = vcmask 130048   ;;  %s360_s0 = inlined_call_operand.vmem [shape: bf16[8,16], index: 0, kind: input, shape index: {}]   ;;  %s361_s1 = inlined_call_operand.vmem [shape: bf16[8,16], index: 1, kind: input, shape index: {}]   ;;  %s362_s2 = inlined_call_operand.vmem [shape: bf16[16,48], index: 2, kind: input, shape index: {}]   ;;  %s363_s3 = inlined_call_operand.vmem [shape: bf16[16,48], index: 3, kind: input, shape index: {}]   ;;  %s364_s4 = inlined_call_operand.vmem [shape: f32[1,48], index: 4, kind: input, shape index: {}]   ;;  %s365_s5 = inlined_call_operand.vmem [shape: bf16[48,24], index: 5, kind: input, shape index: {}]   ;;  %s366_s6 = inlined_call_operand.vmem [shape: f32[1,24], index: 6, kind: input, shape index: {}]   ;;  %s367_s7 = inlined_call_operand.vmem [shape: bf16[24,128], index: 7, kind: input, shape index: {}]   ;;  %s368_s8 = inlined_call_operand.vmem [shape: f32[1,128], index: 8, kind: input, shape index: {}]   ;;  %s369_s9 = inlined_call_operand.hbm [shape: f32[8,128], index: 9, kind: output, shape index: {}]  }
   0x1   :  { %v231_v0 = vld [vmem:[%s363_s3] sm:$0xff]  ;;  %v234_v4 = vld [vmem:[%s365_s5 + $0x10] sm:$0xff] }
   0x2   :  { %v230_v1 = vld [vmem:[%s362_s2] sm:$0xff]  ;;  %57 = vmatpush.bf16.msra.mxu0 %v231_v0 }
   0x3   :  { %v37_v2 = vld [vmem:[%s361_s1] sm:$0xf]  ;;  %79 = vmatpush.bf16.msra.mxu1 %v230_v1 }
   0x4   :  { %v34_v3 = vld [vmem:[%s360_s0] sm:$0xf] }
   0x5   :  { %14 = vsyncpa [#allocation3], 0  ;;  %129 = vmatpush.bf16.msra.mxu2 %v234_v4  ;;  %206 = vmatmul.msk.bf16.vlgmr.msra.gmra.mxu0 %vm46_vm0, %v37_v2  ;;  %v233_v5 = vld [vmem:[%s365_s5 + $0x8] sm:$0xff]  ;;  %v232_v6 = vld [vmem:[%s365_s5] sm:$0xff]  ;;  %vm120_vm1 = vcmask 392192   ;;  %vm159_vm2 = vcmask 1043456  }
   0x6   :  { %211 = vmatmul.msk.bf16.vlgmr.msra.gmra.mxu1 %vm46_vm0, %v34_v3  ;;  %v237_v7 = vld [vmem:[%s364_s4] ss:$0 sm:$0xff]  ;;  %v141_v16 = vld [vmem:[%s367_s7 + $0x8] sm:$0xf]  ;;  %vm155_vm3 = vcmask 195584   ;;  %s193_s29 = sshll.u32 %s369_s9, 4  ;;  %s194_s29 = int_to_ptr.hbm [resolvable:$true] %s193_s29 }
   0x7   :  { %v151_v17 = vunpack.c.l.b16 %v141_v16  ;;  %v235_v20 = vld [vmem:[%s367_s7] sm:$0xff] }
   0x8   :  { %v238_v21 = vld [vmem:[%s366_s6] ss:$0 sm:$0xff]  ;;  %s270_s6 = smov [#allocation2]  }
   0x9   :  { %130 = vmatpush.bf16.msra.mxu2 %v233_v5  ;;  %v153_v18 = vpack.c.b16 %v151_v17, %v151_v17  ;;  %v239_v27 = vld [vmem:[%s368_s8] ss:$0 sm:$0xff]  ;;  %s191_s7 = sshll.u32 %s270_s6, 4  ;;  %s192_s7 = int_to_ptr.vmem [resolvable:$true] %s191_s7 }
   0xb   :  { %v161_v19 = vsel %vm159_vm2, %v153_v18, 0 }
   0xc   :  { %169 = vmatpush.bf16.msra.mxu3 %v161_v19 }
   0xd   :  { %131 = vmatpush.bf16.msra.mxu2 %v232_v6 }
  0x10   :  { %170 = vmatpush.bf16.msra.mxu3 %v235_v20 }
  0x82   :  { %v59_v8 = vpop.f32.mrf.mxu0 }
  0x83   :  { %v81_v9 = vpop.f32.mrf.mxu1 }
  0x84   :  { %v82_v10 = vadd.f32 %v81_v9, %v59_v8 }
  0x86   :  { %v89_v11 = vadd.f32 %v237_v7, %v82_v10 }
  0x88   :  { %v90_v12 = vmax.f32 %v89_v11, 0.0 }
  0x8a   :  { %v91_v13 = vpack.c.bf16 %v90_v12, %v90_v12  ;;  %v61_v14 = vpop.f32.mrf.mxu0 }
  0x8b   :  { %v83_v15 = vpop.f32.mrf.mxu1 }
  0x8c   :  { %224 = vmatmul.msk.bf16.vlgmr.msra.gmra.mxu2 %vm120_vm1, %v91_v13 }
 0x10f   :  { %v133_v22 = vpop.f32.mrf.mxu2 }
 0x110   :  { %v134_v23 = vadd.f32 %v238_v21, %v133_v22 }
 0x112   :  { %v137_v24 = vmax.f32 %v134_v23, 0.0 }
 0x114   :  { %v138_v25 = vpack.c.bf16 %v137_v24, %v137_v24 }
 0x116   :  { %229 = vmatmul.msk.bf16.vlgmr.msra.gmra.mxu3 %vm155_vm3, %v138_v25 }
 0x117   :  { %v135_v26 = vpop.f32.mrf.mxu2 }
 0x199   :  { %v172_v28 = vpop.f32.mrf.mxu3 }
 0x19a   :  { %v173_v29 = vadd.f32 %v239_v27, %v172_v28 }
 0x19c   :  { %176 = vmax.xlane.f32.xlu0 %v173_v29 }
 0x1a1   :  { %v174_v30 = vpop.f32.mrf.mxu3 }
 0x20f   :  { %v177_v31 = vpop.xlane.xlu0 %176 }
 0x210   :  { %v178_v32 = vsub.f32 %v173_v29, %v177_v31 }
 0x212   :  { %v179_v33 = vmul.f32 1.442695, %v178_v32 }
 0x214   :  { %240 = vpow2.f32 %v179_v33 }
 0x21a   :  { %v241_v34 = vpop.eup %240 }
 0x21b   :  { %181 = vadd.xlane.f32.xlu0 %v241_v34 }
 0x28e   :  { %v182_v35 = vpop.xlane.xlu0 %181 }
 0x28f   :  { %242 = vrcp.f32 %v182_v35 }
 0x295   :  { %v243_v36 = vpop.eup %242 }
 0x296   :  { %v184_v37 = vmul.f32 %v243_v36, %v241_v34 }
 0x298   :  { %185 = vst [vmem:[#allocation2] sm:$0xff] %v184_v37 }
 0x299   :  { %196 = dma.vmem_to_hbm [thread:$0]  %s192_s7, 128, %s194_s29, [#allocation3]  }
 0x29a   :  { %268 = dma.done.wait [#allocation3], 128  }
 0x29b   :  { %269 = vsyncadd [#allocation3], 4294967168 }
 0x29c   :  { %201 = vsyncpa [#allocation3], 1 }

</bundles_post_ra>
